<compile_context>
chip_gen: v6e
topology: v6e:2x2x1
jax: 0.10.0
libtpu: 0.0.40
codegen_flags: <defaults>
</compile_context>

<pallas_src>
import jax
import jax.numpy as jnp
from jax import lax
from jax.experimental import pallas as pl
from jax.experimental.pallas import tpu as pltpu


def _round_up(n, m):
    return ((n + m - 1) // m) * m


def _pad_batch(arr, b_pad):
    bsz = arr.shape[0]
    if bsz == b_pad:
        return arr
    pad = [(0, b_pad - bsz)] + [(0, 0)] * (arr.ndim - 1)
    return jnp.pad(arr, pad)


def _make_kernel(has_v, has_b, lane_dense):
    def kernel(*refs):
        it = iter(refs)
        a_ref = next(it)
        x_ref = next(it)
        v_ref = next(it) if has_v else None
        b_ref = next(it) if has_b else None
        out_ref = next(it)

        tb, m_dim, k_dim = a_ref.shape

        # x_c = x - v   (LinearMap translation; float32 accumulation path)
        xc = x_ref[...].astype(jnp.float32)
        if has_v:
            xc = xc - v_ref[...].astype(jnp.float32)

        # y = einsum('bmk,bk->bm', A, x_c), accumulated over K in lane-aligned
        # chunks so the (tb, M, kc) broadcast intermediate stays bounded.
        kc = 128 if (k_dim > 128 and k_dim % 128 == 0) else k_dim
        y = jnp.zeros((tb, m_dim), dtype=jnp.float32)
        for k0 in range(0, k_dim, kc):
            a_chunk = a_ref[:, :, k0:k0 + kc].astype(jnp.float32)   # (tb, M, kc)
            x_chunk = xc[:, k0:k0 + kc]                             # (tb, kc)
            y = y + jnp.sum(a_chunk * x_chunk[:, None, :], axis=-1)

        if has_b:
            y = y + b_ref[...].astype(jnp.float32)                  # LinearMap bias

        z = y * y                                                   # (tb, M) f32
        if lane_dense:
            # out_row[0, b] = sum_m z[b, m]: contract M of a ones row with M of z,
            # result (1, tb) already lives on the lane axis -> unmasked store.
            ones_row = jnp.ones((1, m_dim), dtype=jnp.float32)
            out_row = lax.dot_general(
                ones_row, z, (((1,), (1,)), ((), ())),
                preferred_element_type=jnp.float32)                 # (1, tb)
            out_ref[...] = out_row.astype(out_ref.dtype)
        else:
            out_ref[...] = jnp.sum(z, axis=-1, keepdims=True).astype(out_ref.dtype)

    return kernel


def quadratic_map(a, x, v=None, b=None, *, tb=None, out_dtype=None,
                  target_tile_bytes=3 * 1024 * 1024):
    """QuadraticMap.forward: out[i] = || A[i] @ (x[i] - v[i]) + b[i] ||^2.

    a: (B, M, K) per-batch linear representative A_eta
    x: (B, K)    inputs
    v: (B, K) or None  translation (None <=> 0)
    b: (B, M) or None  bias        (None <=> 0)
    returns (B, 1).
    """
    B, M, K = a.shape
    assert x.shape == (B, K), (x.shape, (B, K))
    has_v = v is not None
    has_b = b is not None
    if has_v:
        assert v.shape == (B, K)
    if has_b:
        assert b.shape == (B, M)
    if out_dtype is None:
        out_dtype = x.dtype

    # --- choose batch tile TB from a VMEM budget for the A tile -------------
    bytes_per_row = M * K * a.dtype.itemsize
    if tb is None:
        rows = max(1, target_tile_bytes // bytes_per_row)
        if rows >= B:
            tb = _round_up(B, 8)              # single tile covers the batch
        elif rows >= 128:
            tb = (rows // 128) * 128          # multi-tile, lane-dense output
        else:
            tb = max(8, (rows // 8) * 8)      # multi-tile, column output
    else:
        tb = max(8, _round_up(tb, 8))

    b_pad = _round_up(B, tb)
    num_tiles = b_pad // tb
    lane_dense = (num_tiles == 1) or (tb % 128 == 0)

    # --- pad batch (zero rows contribute 0 and are sliced off afterwards) ---
    a_p = _pad_batch(a, b_pad)
    x_p = _pad_batch(x, b_pad)
    args = [a_p, x_p]
    in_specs = [
        pl.BlockSpec((tb, M, K), lambda i: (i, 0, 0)),
        pl.BlockSpec((tb, K), lambda i: (i, 0)),
    ]
    if has_v:
        args.append(_pad_batch(v, b_pad))
        in_specs.append(pl.BlockSpec((tb, K), lambda i: (i, 0)))
    if has_b:
        args.append(_pad_batch(b, b_pad))
        in_specs.append(pl.BlockSpec((tb, M), lambda i: (i, 0)))

    if lane_dense:
        out_shape = jax.ShapeDtypeStruct((1, b_pad), out_dtype)
        out_spec = pl.BlockSpec((1, tb), lambda i: (0, i))
    else:
        out_shape = jax.ShapeDtypeStruct((b_pad, 1), out_dtype)
        out_spec = pl.BlockSpec((tb, 1), lambda i: (i, 0))

    in_bytes = sum(int(arr.size) * arr.dtype.itemsize for arr in args)
    cost = pl.CostEstimate(
        flops=2 * b_pad * M * K + 3 * b_pad * M,
        transcendentals=0,
        bytes_accessed=in_bytes + b_pad * jnp.dtype(out_dtype).itemsize,
    )

    out = pl.pallas_call(
        _make_kernel(has_v, has_b, lane_dense),
        out_shape=out_shape,
        grid=(num_tiles,),
        in_specs=in_specs,
        out_specs=out_spec,
        compiler_params=pltpu.CompilerParams(
            dimension_semantics=("parallel",)),
        cost_estimate=cost,
    )(*args)

    if lane_dense:
        out = out.reshape(b_pad, 1)
    return out[:B]


if __name__ == "__main__":
    key = jax.random.PRNGKey(0)
    ka, kx, kv, kb = jax.random.split(key, 4)

    # --- Test 1: full LinearMap semantics (A, v, b all present), tiny batch.
    B, M, K = 2, 32, 32
    a = jax.random.normal(ka, (B, M, K), dtype=jnp.float32)
    x = jax.random.normal(kx, (B, K), dtype=jnp.float32)
    v = jax.random.normal(kv, (B, K), dtype=jnp.float32)
    b = jax.random.normal(kb, (B, M), dtype=jnp.float32)

    out = quadratic_map(a, x, v, b)
    jax.block_until_ready(out)

    y_ref = jnp.einsum("bmk,bk->bm", a, x - v) + b
    ref = jnp.sum(y_ref * y_ref, axis=-1, keepdims=True)
    assert out.shape == (B, 1), out.shape
    assert jnp.allclose(out, ref, rtol=1e-4, atol=1e-3), (out, ref)

    # --- Test 2: from_sym_tensorrep path (v=None, b=None); exercise multi-tile
    #     batch pipelining + lane-dense output + tail-tile padding.
    B2 = 200
    a2 = jax.random.normal(ka, (B2, M, K), dtype=jnp.float32)
    x2 = jax.random.normal(kx, (B2, K), dtype=jnp.float32)

    out2 = quadratic_map(a2, x2, tb=128)   # 2 grid steps of 128 rows each
    jax.block_until_ready(out2)

    y2 = jnp.einsum("bmk,bk->bm", a2, x2)
    ref2 = jnp.sum(y2 * y2, axis=-1, keepdims=True)
    assert out2.shape == (B2, 1), out2.shape
    assert jnp.allclose(out2, ref2, rtol=1e-4, atol=1e-2), (out2, ref2)

    print("KERNEL_OK")
</pallas_src>

<mosaic_0001>
module attributes {stable_mosaic.version = 11 : i64} {
  func.func @kernel(%arg0: i32, %arg1: memref<8x32x32xf32, #tpu.memory_space<vmem>>, %arg2: memref<8x32xf32, #tpu.memory_space<vmem>>, %arg3: memref<8x32xf32, #tpu.memory_space<vmem>>, %arg4: memref<8x32xf32, #tpu.memory_space<vmem>>, %arg5: memref<1x8xf32, #tpu.memory_space<vmem>>) attributes {dimension_semantics = [#tpu.dimension_semantics<parallel>], iteration_bounds = array<i64: 1>, scalar_prefetch = 0 : i64, scratch_operands = 0 : i64, tpu.core_type = #tpu.core_type<tc>, window_params = [{transform_indices = @transform_0, window_bounds = array<i64: 8, 32, 32>}, {transform_indices = @transform_1, window_bounds = array<i64: 8, 32>}, {transform_indices = @transform_2, window_bounds = array<i64: 8, 32>}, {transform_indices = @transform_3, window_bounds = array<i64: 8, 32>}, {transform_indices = @transform_4, window_bounds = array<i64: 1, 8>}]} {
    %c0 = arith.constant 0 : index
    %c0_0 = arith.constant 0 : index
    %0 = vector.load %arg2[%c0, %c0_0] : memref<8x32xf32, #tpu.memory_space<vmem>>, vector<8x32xf32>
    %c0_1 = arith.constant 0 : index
    %c0_2 = arith.constant 0 : index
    %1 = vector.load %arg3[%c0_1, %c0_2] : memref<8x32xf32, #tpu.memory_space<vmem>>, vector<8x32xf32>
    %2 = arith.subf %0, %1 : vector<8x32xf32>
    %cst = arith.constant 0.000000e+00 : f32
    %3 = vector.broadcast %cst : f32 to vector<8x32xf32>
    %c0_3 = arith.constant 0 : index
    %c0_4 = arith.constant 0 : index
    %c0_5 = arith.constant 0 : index
    %4 = vector.load %arg1[%c0_3, %c0_4, %c0_5] : memref<8x32x32xf32, #tpu.memory_space<vmem>>, vector<8x32x32xf32>
    %5 = vector.shape_cast %2 : vector<8x32xf32> to vector<8x1x32xf32>
    %6 = vector.broadcast %5 : vector<8x1x32xf32> to vector<8x32x32xf32>
    %7 = arith.mulf %4, %6 : vector<8x32x32xf32>
    %cst_6 = arith.constant dense<0.000000e+00> : vector<8x32xf32>
    %8 = vector.multi_reduction <add>, %7, %cst_6 [2] : vector<8x32x32xf32> to vector<8x32xf32>
    %9 = arith.addf %3, %8 : vector<8x32xf32>
    %c0_7 = arith.constant 0 : index
    %c0_8 = arith.constant 0 : index
    %10 = vector.load %arg4[%c0_7, %c0_8] : memref<8x32xf32, #tpu.memory_space<vmem>>, vector<8x32xf32>
    %11 = arith.addf %9, %10 : vector<8x32xf32>
    %12 = arith.mulf %11, %11 : vector<8x32xf32>
    %cst_9 = arith.constant 1.000000e+00 : f32
    %13 = vector.broadcast %cst_9 : f32 to vector<1x32xf32>
    %cst_10 = arith.constant dense<0.000000e+00> : vector<1x8xf32>
    %14 = tpu.matmul %13, %12, %cst_10 {dimension_numbers = #tpu.dot_dimension_numbers<[1], [1], [0], [0], [0, 0, 1, 0], [], []>} : vector<1x32xf32>, vector<8x32xf32>, vector<1x8xf32> -> vector<1x8xf32>
    %c0_11 = arith.constant 0 : index
    %c0_12 = arith.constant 0 : index
    %15 = vector.load %arg5[%c0_11, %c0_12] : memref<1x8xf32, #tpu.memory_space<vmem>>, vector<1x8xf32>
    tpu.vector_store %arg5[%c0_11, %c0_12], %14 {strides = array<i32>} : memref<1x8xf32, #tpu.memory_space<vmem>>, vector<1x8xf32>,
    return
  }
  func.func @transform_0(%arg0: i32) -> (i32, i32, i32) {
    %c0_i32 = arith.constant 0 : i32
    %c0_i32_0 = arith.constant 0 : i32
    %c0_i32_1 = arith.constant 0 : i32
    return %arg0, %c0_i32, %c0_i32_0 : i32, i32, i32
  }
  func.func @transform_1(%arg0: i32) -> (i32, i32) {
    %c0_i32 = arith.constant 0 : i32
    %c0_i32_0 = arith.constant 0 : i32
    return %arg0, %c0_i32 : i32, i32
  }
  func.func @transform_2(%arg0: i32) -> (i32, i32) {
    %c0_i32 = arith.constant 0 : i32
    %c0_i32_0 = arith.constant 0 : i32
    return %arg0, %c0_i32 : i32, i32
  }
  func.func @transform_3(%arg0: i32) -> (i32, i32) {
    %c0_i32 = arith.constant 0 : i32
    %c0_i32_0 = arith.constant 0 : i32
    return %arg0, %c0_i32 : i32, i32
  }
  func.func @transform_4(%arg0: i32) -> (i32, i32) {
    %c0_i32 = arith.constant 0 : i32
    %c0_i32_0 = arith.constant 0 : i32
    return %c0_i32, %arg0 : i32, i32
  }
}

</mosaic_0001>

<bundles_post_ra>
// kernel: tpu_custom_call.1
= control target key start
LH: loop header
LB: loop body
LE: loop exit
PB: predicated region body
PF: predicated region fallthrough
CT: control target
= control target key end

     0   :  { %9 = vsyncpa [#allocation3], 0  ;;  %s1414_s0 = inlined_call_operand.hbm [shape: f32[8,32,32], index: 0, kind: input, shape index: {}]   ;;  %s1415_s1 = inlined_call_operand.hbm [shape: f32[8,32], index: 1, kind: input, shape index: {}]   ;;  %s1416_s2 = inlined_call_operand.hbm [shape: f32[8,32], index: 2, kind: input, shape index: {}]   ;;  %s1417_s3 = inlined_call_operand.hbm [shape: f32[8,32], index: 3, kind: input, shape index: {}]   ;;  %s1418_s4 = inlined_call_operand.hbm [shape: f32[1,8], index: 4, kind: output, shape index: {}]  }
   0x1   :  { %10 = vsyncpa [#allocation6], 0 }
   0x2   :  { %11 = vsyncpa [#allocation9], 0 }
   0x3   :  { %12 = vsyncpa [#allocation4], 0  ;;  %s1130_s15 = smov [#allocation5]   ;;  %s1131_s17 = smov [#allocation2]  }
   0x4   :  { %s31_s16 = sshll.u32 %s1130_s15, 4  ;;  %s18_s18 = sshll.u32 %s1131_s17, 4  ;;  %s32_s16 = int_to_ptr.vmem [resolvable:$true] %s31_s16  ;;  %s19_s18 = int_to_ptr.vmem [resolvable:$true] %s18_s18 }
   0x5   :  { %s1030_s19 = scalar_lea.vmem %s32_s16, 128  ;;  %p1035_p1 = scmp.lt.s32.totalorder %s32_s16, %s32_s16 }
   0x6   :  { %p1031_p0 = scmp.ne.s32.totalorder %s32_s16, %s1030_s19  ;;  %p1036_p2 = scmp.lt.s32.totalorder %s1030_s19, %s1030_s19 }
   0x8   :  { %p1037_p3 = por %p1036_p2, %p1035_p1 }
   0xa   :  { %p1038_p4 = pnand %p1037_p3, %p1031_p0 }
   0xc   :  { %1041 = shalt.err (!%p1038_p4)
}
   0xd   :  { %34 = dma.hbm_to_vmem [thread:$0]  %s1415_s1, 128, %s32_s16, [#allocation6]  }
   0xe   :  { %s1050_s22 = scalar_lea.vmem %s19_s18, 4096  ;;  %p1055_p6 = scmp.lt.s32.totalorder %s19_s18, %s19_s18 }
   0xf   :  { %p1051_p5 = scmp.ne.s32.totalorder %s19_s18, %s1050_s22  ;;  %p1056_p7 = scmp.lt.s32.totalorder %s1050_s22, %s1050_s22 }
  0x11   :  { %p1057_p8 = por %p1056_p7, %p1055_p6 }
  0x13   :  { %p1058_p9 = pnand %p1057_p8, %p1051_p5 }
  0x15   :  { %1061 = shalt.err (!%p1058_p9)
}
  0x16   :  { %s1132_s23 = smov 128   ;;  %s1133_s24 = smov 8  }
  0x17   :  { %24 = dma.hbm_to_vmem [thread:$0]  %s1414_s0, 4096, %s19_s18, [#allocation3], %s1132_s23, %s1132_s23, %s1133_s24  }
  0x18   :  { %s1134_s27 = smov [#allocation7]   ;;  %s1135_s29 = smov [#allocation8]  }
  0x19   :  { %s41_s28 = sshll.u32 %s1134_s27, 4  ;;  %s51_s30 = sshll.u32 %s1135_s29, 4  ;;  %s42_s28 = int_to_ptr.vmem [resolvable:$true] %s41_s28  ;;  %s52_s30 = int_to_ptr.vmem [resolvable:$true] %s51_s30 }
  0x1a   :  { %s1070_s1 = scalar_lea.vmem %s42_s28, 128  ;;  %p1075_p11 = scmp.lt.s32.totalorder %s42_s28, %s42_s28 }
  0x1b   :  { %p1071_p10 = scmp.ne.s32.totalorder %s42_s28, %s1070_s1  ;;  %p1076_p12 = scmp.lt.s32.totalorder %s1070_s1, %s1070_s1 }
  0x1d   :  { %p1077_p13 = por %p1076_p12, %p1075_p11 }
  0x1f   :  { %p1078_p0 = pnand %p1077_p13, %p1071_p10 }
  0x21   :  { %1081 = shalt.err (!%p1078_p0)
}
  0x22   :  { %44 = dma.hbm_to_vmem [thread:$0]  %s1416_s2, 128, %s42_s28, [#allocation6]  }
  0x23   :  { %s1090_s7 = scalar_lea.vmem %s52_s30, 128  ;;  %p1095_p2 = scmp.lt.s32.totalorder %s52_s30, %s52_s30 }
  0x24   :  { %p1091_p1 = scmp.ne.s32.totalorder %s52_s30, %s1090_s7  ;;  %p1096_p3 = scmp.lt.s32.totalorder %s1090_s7, %s1090_s7 }
  0x26   :  { %p1097_p4 = por %p1096_p3, %p1095_p2 }
  0x28   :  { %p1098_p5 = pnand %p1097_p4, %p1091_p1 }
  0x2a   :  { %1101 = shalt.err (!%p1098_p5)
}
  0x2b   :  { %54 = dma.hbm_to_vmem [thread:$0]  %s1417_s3, 128, %s52_s30, [#allocation9]  }
  0x2c   :  { %1122 = dma.done.wait [#allocation3], 4096  }
  0x2d   :  { %1123 = vsyncadd [#allocation3], 4294963200 }
  0x2e   :  { %1124 = dma.done.wait [#allocation6], 256  }
  0x2f   :  { %1125 = vsyncadd [#allocation6], 4294967040 }
  0x30   :  { %1126 = dma.done.wait [#allocation9], 128  }
  0x31   :  { %1127 = vsyncadd [#allocation9], 4294967168  ;;  %v107_v0 = vlaneseq  ;;  %v1136_v1 = vmov 1966171168   ;;  %v67_v6 = vld [vmem:[#allocation5] sm:$0xff]  ;;  %v68_v7 = vld [vmem:[#allocation7] sm:$0xff] }
  0x32   :  { %v105_v2 = vunpack.c.l.s4 %v1136_v1  ;;  %v69_v8 = vsub.f32 %v67_v6, %v68_v7  ;;  %v70_v13 = vld [vmem:[#allocation2] sm:$0xff]  ;;  %v71_v14 = vld [vmem:[#allocation2 + $0x8] sm:$0xff]  ;;  %vm224_vm0 = vcmask 261120   ;;  %v72_v22 = vld [vmem:[#allocation2 + $0x10] sm:$0xff]  ;;  %vm1139_vm1 = vmmov 0   ;;  %s1141_s2 = smov [#allocation10]  }
  0x33   :  { %v1180_v3 = vshrl.u32 %v107_v0, 7  ;;  %v74_v17 = vld [vmem:[#allocation2 + $0x20] sm:$0xff]  ;;  %v75_v18 = vld [vmem:[#allocation2 + $0x28] sm:$0xff]  ;;  %v76_v27 = vld [vmem:[#allocation2 + $0x30] sm:$0xff]  ;;  %vm742_vm2 = vcmask 130112   ;;  %vm749_vm3 = vcmask 195712  }
  0x34   :  { %v106_v4 = vunpack.c.0.s8 %v105_v2  ;;  %v73_v31 = vld [vmem:[#allocation2 + $0x18] sm:$0xff]  ;;  %v79_v35 = vld [vmem:[#allocation2 + $0x48] sm:$0xff]  ;;  %v78_v38 = vld [vmem:[#allocation2 + $0x40] sm:$0xff]  ;;  %v103_v42 = vcombine.high %v69_v8, %v69_v8  ;;  %vm756_vm4 = vcmask 261312   ;;  %vm891_vm5 = vcmask 1041409   ;;  %s988_s3 = sshll.u32 %s1141_s2, 4  ;;  %s989_s3 = int_to_ptr.vmem [resolvable:$true] %s988_s3 }
  0x35   :  { %v1187_v10 = vsub.s32 0, %v1180_v3  ;;  %v77_v43 = vld [vmem:[#allocation2 + $0x38] sm:$0xff]  ;;  %v80_v46 = vld [vmem:[#allocation2 + $0x50] sm:$0xff]  ;;  %v82_v51 = vld [vmem:[#allocation2 + $0x60] sm:$0xff]  ;;  %vm893_vm6 = vcmask 1042434   ;;  %vm895_vm7 = vcmask 1043459   ;;  %p1107_p7 = scmp.lt.s32.totalorder %s989_s3, %s989_s3 }
  0x36   :  { %v1183_v5 = vsub.s32 %v106_v4, %v1180_v3  ;;  %v83_v54 = vld [vmem:[#allocation2 + $0x68] sm:$0xff]  ;;  %v81_v58 = vld [vmem:[#allocation2 + $0x58] sm:$0xff]  ;;  %v84_v61 = vld [vmem:[#allocation2 + $0x70] sm:$0xff]  ;;  %vm897_vm8 = vcmask 1044484   ;;  %vm899_vm9 = vcmask 1045509   ;;  %vm901_vm10 = vcmask 1046534  }
  0x37   :  { %v86_v4 = vld [vmem:[#allocation2 + $0x80] sm:$0xff]  ;;  %vm903_vm11 = vcmask 1047559   ;;  %vm980_vm12 = vcmask 57344   ;;  %s1102_s9 = scalar_lea.vmem %s989_s3, 16  ;;  %s1106_s10 = scalar_lea.vmem %s989_s3, 32 }
  0x38   :  { %v110_v9 = vrot.slane %v69_v8, %v1183_v5  ;;  %v117_v50 = vrot.slane %v103_v42, %v1183_v5  ;;  %v87_v8 = vld [vmem:[#allocation2 + $0x88] sm:$0xff]  ;;  %p1103_p6 = scmp.ne.s32.totalorder %s989_s3, %s1102_s9  ;;  %p1108_p8 = scmp.lt.s32.totalorder %s1106_s10, %s1102_s9 }
  0x3a   :  { %v126_v11 = vrot.slane %v110_v9, %v1183_v5  ;;  %v118_v12 = vcombine.high %v110_v9, %v110_v9  ;;  %v133_v57 = vrot.slane %v117_v50, %v1183_v5  ;;  %v119_v2 = vcombine.high %v117_v50, %v117_v50  ;;  %v99_v50 = vld [vmem:[#allocation2 + $0xe8] sm:$0xff]  ;;  %p1109_p9 = por %p1108_p8, %p1107_p7 }
  0x3c   :  { %v155_v15 = vrot.slane %v126_v11, %v1187_v10  ;;  %v140_v16 = vrot.slane %v118_v12, %v1183_v5  ;;  %v148_v26 = vcombine.high %v126_v11, %v126_v11  ;;  %v171_v1 = vrot.slane %v133_v57, %v1187_v10  ;;  %p1110_p10 = pnand %p1109_p9, %p1103_p6 }
  0x3d   :  { %v147_v12 = vrot.slane %v119_v2, %v1183_v5 }
  0x3e   :  { %v192_v19 = vmul.f32 %v155_v15, %v70_v13  ;;  %v159_v20 = vrot.slane %v140_v16, %v1187_v10  ;;  %v193_v21 = vmul.f32 %v155_v15, %v71_v14  ;;  %v194_v30 = vmul.f32 %v155_v15, %v72_v22  ;;  %v85_v13 = vld [vmem:[#allocation2 + $0x78] sm:$0xff] }
  0x3f   :  { %v163_v34 = vrot.slane %v148_v26, %v1187_v10  ;;  %v195_v37 = vmul.f32 %v155_v15, %v73_v31  ;;  %v150_v41 = vcombine.high %v140_v16, %v140_v16  ;;  %v208_v11 = vmul.f32 %v171_v1, %v86_v4  ;;  %v88_v16 = vld [vmem:[#allocation2 + $0x90] sm:$0xff]  ;;  %v89_v26 = vld [vmem:[#allocation2 + $0x98] sm:$0xff] }
  0x40   :  { %v225_v23 = vsel %vm224_vm0, %v192_v19, 0.0  ;;  %v196_v24 = vmul.f32 %v159_v20, %v74_v17  ;;  %v197_v25 = vmul.f32 %v159_v20, %v75_v18  ;;  %v228_v29 = vsel %vm224_vm0, %v193_v21, 0.0  ;;  %v353_v4 = vld [vmem:[#allocation8] sm:$0xff] }
  0x41   :  { %226 = vadd.xlane.f32.xlu0 %v225_v23  ;;  %v198_v33 = vmul.f32 %v159_v20, %v76_v27  ;;  %v231_v36 = vsel %vm224_vm0, %v194_v30, 0.0  ;;  %v201_v40 = vmul.f32 %v163_v34, %v79_v35  ;;  %v234_v44 = vsel %vm224_vm0, %v195_v37, 0.0  ;;  %v91_v23 = vld [vmem:[#allocation2 + $0xa8] sm:$0xff] }
  0x42   :  { %v237_v28 = vsel %vm224_vm0, %v196_v24, 0.0  ;;  %v240_v32 = vsel %vm224_vm0, %v197_v25, 0.0  ;;  %v200_v45 = vmul.f32 %v163_v34, %v78_v38  ;;  %v199_v48 = vmul.f32 %v159_v20, %v77_v43  ;;  %v90_v20 = vld [vmem:[#allocation2 + $0xa0] sm:$0xff]  ;;  %v96_v43 = vld [vmem:[#allocation2 + $0xd0] sm:$0xff] }
  0x43   :  { %238 = vadd.xlane.f32.xlu1 %v237_v28  ;;  %v243_v39 = vsel %vm224_vm0, %v198_v33, 0.0  ;;  %v252_v47 = vsel %vm224_vm0, %v201_v40, 0.0  ;;  %v167_v49 = vrot.slane %v150_v41, %v1187_v10  ;;  %v202_v53 = vmul.f32 %v163_v34, %v80_v46  ;;  %v94_v33 = vld [vmem:[#allocation2 + $0xc0] sm:$0xff]  ;;  %v93_v40 = vld [vmem:[#allocation2 + $0xb8] sm:$0xff] }
  0x44   :  { %v249_v52 = vsel %vm224_vm0, %v200_v45, 0.0  ;;  %v246_v55 = vsel %vm224_vm0, %v199_v48, 0.0  ;;  %v203_v63 = vmul.f32 %v163_v34, %v81_v58  ;;  %v209_v15 = vmul.f32 %v171_v1, %v87_v8 }
  0x45   :  { %229 = vadd.xlane.f32.xlu0 %v228_v29  ;;  %v204_v56 = vmul.f32 %v167_v49, %v82_v51  ;;  %v255_v59 = vsel %vm224_vm0, %v202_v53, 0.0  ;;  %v205_v60 = vmul.f32 %v167_v49, %v83_v54  ;;  %v206_v7 = vmul.f32 %v167_v49, %v84_v61  ;;  %v92_v29 = vld [vmem:[#allocation2 + $0xb0] sm:$0xff]  ;;  %v97_v53 = vld [vmem:[#allocation2 + $0xd8] sm:$0xff] }
  0x46   :  { %v258_v9 = vsel %vm224_vm0, %v203_v63, 0.0  ;;  %v273_v17 = vsel %vm224_vm0, %v208_v11, 0.0  ;;  %v207_v18 = vmul.f32 %v167_v49, %v85_v13  ;;  %v175_v19 = vrot.slane %v147_v12, %v1187_v10 }
  0x47   :  { %241 = vadd.xlane.f32.xlu1 %v240_v32  ;;  %v261_v62 = vsel %vm224_vm0, %v204_v56, 0.0  ;;  %v264_v6 = vsel %vm224_vm0, %v205_v60, 0.0  ;;  %v267_v14 = vsel %vm224_vm0, %v206_v7, 0.0  ;;  %v276_v21 = vsel %vm224_vm0, %v209_v15, 0.0  ;;  %v100_v56 = vld [vmem:[#allocation2 + $0xf0] sm:$0xff] }
  0x48   :  { %v210_v22 = vmul.f32 %v171_v1, %v88_v16  ;;  %v270_v5 = vsel %vm224_vm0, %v207_v18, 0.0  ;;  %v212_v24 = vmul.f32 %v175_v19, %v90_v20  ;;  %v149_v25 = vcombine.high %v133_v57, %v133_v57 }
  0x49   :  { %232 = vadd.xlane.f32.xlu0 %v231_v36  ;;  %v213_v28 = vmul.f32 %v175_v19, %v91_v23  ;;  %v211_v31 = vmul.f32 %v171_v1, %v89_v26  ;;  %v214_v35 = vmul.f32 %v175_v19, %v92_v29  ;;  %v95_v36 = vld [vmem:[#allocation2 + $0xc8] sm:$0xff]  ;;  %v215_v45 = vmul.f32 %v175_v19, %v93_v40 }
  0x4a   :  { %v279_v27 = vsel %vm224_vm0, %v210_v22, 0.0  ;;  %v285_v30 = vsel %vm224_vm0, %v212_v24, 0.0  ;;  %v179_v32 = vrot.slane %v149_v25, %v1187_v10  ;;  %v358_v7 = vrot.slane %v353_v4, %v1187_v10 }
  0x4b   :  { %244 = vadd.xlane.f32.xlu1 %v243_v39  ;;  %v288_v34 = vsel %vm224_vm0, %v213_v28, 0.0  ;;  %v282_v37 = vsel %vm224_vm0, %v211_v31, 0.0  ;;  %v151_v39 = vcombine.high %v147_v12, %v147_v12  ;;  %v291_v41 = vsel %vm224_vm0, %v214_v35, 0.0 }
  0x4c   :  { %v216_v38 = vmul.f32 %v179_v32, %v94_v33  ;;  %v217_v42 = vmul.f32 %v179_v32, %v95_v36  ;;  %v218_v49 = vmul.f32 %v179_v32, %v96_v43  ;;  %v294_v51 = vsel %vm224_vm0, %v215_v45, 0.0 }
  0x4d   :  { %235 = vadd.xlane.f32.xlu0 %v234_v44  ;;  %v183_v46 = vrot.slane %v151_v39, %v1187_v10  ;;  %v219_v58 = vmul.f32 %v179_v32, %v97_v53  ;;  %v1137_v8 = vmov 0   ;;  %v395_v11 = vsub.s32 2, %v1180_v3 }
  0x4e   :  { %v297_v44 = vsel %vm224_vm0, %v216_v38, 0.0  ;;  %v300_v48 = vsel %vm224_vm0, %v217_v42, 0.0  ;;  %v303_v54 = vsel %vm224_vm0, %v218_v49, 0.0  ;;  %1020 = vset.pattern.permute.xlu0 %v1137_v8  ;;  %1021 = vset.pattern.permute.xlu1 %v1137_v8  ;;  %v414_v13 = vsub.s32 3, %v1180_v3 }
  0x4f   :  { %253 = vadd.xlane.f32.xlu1 %v252_v47  ;;  %v98_v47 = vld [vmem:[#allocation2 + $0xe0] sm:$0xff]  ;;  %v222_v61 = vmul.f32 %v183_v46, %v100_v56  ;;  %v396_v12 = vrot.slane %v353_v4, %v395_v11  ;;  %v452_v16 = vsub.s32 5, %v1180_v3  ;;  %v471_v18 = vsub.s32 6, %v1180_v3 }
  0x50   :  { %v415_v10 = vrot.slane %v353_v4, %v414_v13  ;;  %v490_v20 = vsub.s32 7, %v1180_v3 }
  0x51   :  { %250 = vadd.xlane.f32.xlu0 %v249_v52  ;;  %v220_v52 = vmul.f32 %v183_v46, %v98_v47  ;;  %v315_v1 = vsel %vm224_vm0, %v222_v61, 0.0  ;;  %v472_v19 = vrot.slane %v353_v4, %v471_v18 }
  0x53   :  { %247 = vadd.xlane.f32.xlu1 %v246_v55  ;;  %v221_v55 = vmul.f32 %v183_v46, %v99_v50  ;;  %v309_v57 = vsel %vm224_vm0, %v220_v52, 0.0 }
  0x55   :  { %256 = vadd.xlane.f32.xlu0 %v255_v59  ;;  %v101_v59 = vld [vmem:[#allocation2 + $0xf8] sm:$0xff]  ;;  %v312_v60 = vsel %vm224_vm0, %v221_v55, 0.0 }
  0x56   :  { %v223_v63 = vmul.f32 %v183_v46, %v101_v59 }
  0x57   :  { %262 = vadd.xlane.f32.xlu1 %v261_v62  ;;  %v306_v62 = vsel %vm224_vm0, %v219_v58, 0.0 }
  0x58   :  { %v318_v2 = vsel %vm224_vm0, %v223_v63, 0.0 }
  0x59   :  { %265 = vadd.xlane.f32.xlu0 %v264_v6  ;;  %v376_v6 = vsub.s32 1, %v1180_v3 }
  0x5b   :  { %259 = vadd.xlane.f32.xlu1 %v258_v9  ;;  %v377_v9 = vrot.slane %v353_v4, %v376_v6 }
  0x5d   :  { %268 = vadd.xlane.f32.xlu0 %v267_v14  ;;  %v433_v14 = vsub.s32 4, %v1180_v3 }
  0x5f   :  { %274 = vadd.xlane.f32.xlu1 %v273_v17  ;;  %v434_v15 = vrot.slane %v353_v4, %v433_v14  ;;  %v453_v17 = vrot.slane %v353_v4, %v452_v16 }
  0x61   :  { %277 = vadd.xlane.f32.xlu0 %v276_v21  ;;  %v491_v21 = vrot.slane %v353_v4, %v490_v20 }
  0x63   :  { %271 = vadd.xlane.f32.xlu1 %v270_v5 }
  0x65   :  { %280 = vadd.xlane.f32.xlu0 %v279_v27 }
  0x67   :  { %286 = vadd.xlane.f32.xlu1 %v285_v30 }
  0x69   :  { %289 = vadd.xlane.f32.xlu0 %v288_v34 }
  0x6b   :  { %283 = vadd.xlane.f32.xlu1 %v282_v37 }
  0x6d   :  { %292 = vadd.xlane.f32.xlu0 %v291_v41 }
  0x6f   :  { %298 = vadd.xlane.f32.xlu1 %v297_v44 }
  0x71   :  { %301 = vadd.xlane.f32.xlu0 %v300_v48 }
  0x73   :  { %295 = vadd.xlane.f32.xlu1 %v294_v51 }
  0x75   :  { %304 = vadd.xlane.f32.xlu0 %v303_v54 }
  0x77   :  { %310 = vadd.xlane.f32.xlu1 %v309_v57 }
  0x79   :  { %313 = vadd.xlane.f32.xlu0 %v312_v60 }
  0x7b   :  { %307 = vadd.xlane.f32.xlu1 %v306_v62 }
  0x7d   :  { %316 = vadd.xlane.f32.xlu0 %v315_v1 }
  0x7f   :  { %319 = vadd.xlane.f32.xlu1 %v318_v2 }
  0x90   :  { %364 = vbcast.lane.b32.xlu1 %v358_v7, 264 }
  0x93   :  { %360 = vbcast.lane.b32.xlu0 %v358_v7, 256 }
  0x94   :  { %379 = vbcast.lane.b32.xlu1 %v377_v9, 256 }
  0x97   :  { %368 = vbcast.lane.b32.xlu0 %v358_v7, 272 }
  0x98   :  { %383 = vbcast.lane.b32.xlu1 %v377_v9, 264 }
  0x9b   :  { %398 = vbcast.lane.b32.xlu0 %v396_v12, 256 }
  0x9c   :  { %387 = vbcast.lane.b32.xlu1 %v377_v9, 272 }
  0x9f   :  { %372 = vbcast.lane.b32.xlu0 %v358_v7, 280 }
  0xa0   :  { %402 = vbcast.lane.b32.xlu1 %v396_v12, 264 }
  0xa3   :  { %406 = vbcast.lane.b32.xlu0 %v396_v12, 272 }
  0xa4   :  { %391 = vbcast.lane.b32.xlu1 %v377_v9, 280 }
  0xa7   :  { %421 = vbcast.lane.b32.xlu0 %v415_v10, 264 }
  0xa8   :  { %417 = vbcast.lane.b32.xlu1 %v415_v10, 256 }
  0xab   :  { %425 = vbcast.lane.b32.xlu0 %v415_v10, 272 }
  0xac   :  { %410 = vbcast.lane.b32.xlu1 %v396_v12, 280 }
  0xaf   :  { %440 = vbcast.lane.b32.xlu0 %v434_v15, 264 }
  0xb0   :  { %436 = vbcast.lane.b32.xlu1 %v434_v15, 256 }
  0xb3   :  { %444 = vbcast.lane.b32.xlu0 %v434_v15, 272 }
  0xb4   :  { %429 = vbcast.lane.b32.xlu1 %v415_v10, 280 }
  0xb7   :  { %459 = vbcast.lane.b32.xlu0 %v453_v17, 264 }
  0xb8   :  { %455 = vbcast.lane.b32.xlu1 %v453_v17, 256 }
  0xbb   :  { %463 = vbcast.lane.b32.xlu0 %v453_v17, 272 }
  0xbc   :  { %448 = vbcast.lane.b32.xlu1 %v434_v15, 280 }
  0xbf   :  { %478 = vbcast.lane.b32.xlu0 %v472_v19, 264 }
  0xc0   :  { %474 = vbcast.lane.b32.xlu1 %v472_v19, 256 }
  0xc3   :  { %482 = vbcast.lane.b32.xlu0 %v472_v19, 272 }
  0xc4   :  { %467 = vbcast.lane.b32.xlu1 %v453_v17, 280 }
  0xc7   :  { %497 = vbcast.lane.b32.xlu0 %v491_v21, 264 }
  0xc8   :  { %493 = vbcast.lane.b32.xlu1 %v491_v21, 256 }
  0xca   :  { %v227_v22 = vpop.xlane.xlu0 %226 }
  0xcb   :  { %501 = vbcast.lane.b32.xlu0 %v491_v21, 272 }
  0xcc   :  { %v239_v23 = vpop.xlane.xlu1 %238  ;;  %486 = vbcast.lane.b32.xlu1 %v472_v19, 280 }
  0xce   :  { %v230_v5 = vpop.xlane.xlu0 %229 }
  0xd0   :  { %v242_v24 = vpop.xlane.xlu1 %241  ;;  %505 = vbcast.lane.b32.xlu1 %v491_v21, 280 }
  0xd2   :  { %v233_v25 = vpop.xlane.xlu0 %232 }
  0xd4   :  { %v245_v26 = vpop.xlane.xlu1 %244 }
  0xd6   :  { %v236_v27 = vpop.xlane.xlu0 %235 }
  0xd8   :  { %v254_v28 = vpop.xlane.xlu1 %253 }
  0xda   :  { %v251_v29 = vpop.xlane.xlu0 %250 }
  0xdc   :  { %v248_v30 = vpop.xlane.xlu1 %247 }
  0xde   :  { %v257_v31 = vpop.xlane.xlu0 %256 }
  0xe0   :  { %v1242_v32 = vpop.xlane.xlu1 %262 }
  0xe2   :  { %v1244_v33 = vpop.xlane.xlu0 %265 }
  0xe4   :  { %v1246_v34 = vpop.xlane.xlu1 %259 }
  0xe6   :  { %v1248_v35 = vpop.xlane.xlu0 %268 }
  0xe8   :  { %v1250_v36 = vpop.xlane.xlu1 %274 }
  0xea   :  { %v1252_v37 = vpop.xlane.xlu0 %277 }
  0xec   :  { %v1254_v38 = vpop.xlane.xlu1 %271 }
  0xee   :  { %v1256_v39 = vpop.xlane.xlu0 %280 }
  0xf0   :  { %v1258_v40 = vpop.xlane.xlu1 %286 }
  0xf2   :  { %v1260_v41 = vpop.xlane.xlu0 %289 }
  0xf4   :  { %v1262_v42 = vpop.xlane.xlu1 %283 }
  0xf6   :  { %v1264_v43 = vpop.xlane.xlu0 %292 }
  0xf8   :  { %v1266_v44 = vpop.xlane.xlu1 %298 }
  0xfa   :  { %v1268_v45 = vpop.xlane.xlu0 %301 }
  0xfc   :  { %v1270_v46 = vpop.xlane.xlu1 %295 }
  0xfe   :  { %v1272_v47 = vpop.xlane.xlu0 %304 }
 0x100   :  { %v1274_v48 = vpop.xlane.xlu1 %310 }
 0x102   :  { %v1276_v49 = vpop.xlane.xlu0 %313 }
 0x104   :  { %v1278_v50 = vpop.xlane.xlu1 %307 }
 0x106   :  { %v1280_v51 = vpop.xlane.xlu0 %316 }
 0x108   :  { %v1282_v52 = vpop.xlane.xlu1 %319 }
 0x10a   :  { %v361_v53 = vpop.permute.xlu0 %360 }
 0x10b   :  { %v539_v54 = vadd.f32 %v361_v53, %v227_v22 }
 0x10c   :  { %v365_v55 = vpop.permute.xlu1 %364 }
 0x10d   :  { %v571_v56 = vmul.f32 %v539_v54, %v539_v54  ;;  %v540_v57 = vadd.f32 %v365_v55, %v230_v5 }
 0x10e   :  { %v369_v58 = vpop.permute.xlu0 %368 }
 0x10f   :  { %v572_v59 = vmul.f32 %v540_v57, %v540_v57  ;;  %v541_v60 = vadd.f32 %v369_v58, %v233_v25  ;;  %636 = vperm.xlu0 %1020, %v571_v56  }
 0x110   :  { %v380_v61 = vpop.permute.xlu1 %379 }
 0x111   :  { %639 = vperm.xlu1 %1021, %v572_v59   ;;  %v573_v63 = vmul.f32 %v541_v60, %v541_v60  ;;  %v543_v9 = vadd.f32 %v380_v61, %v239_v23 }
 0x112   :  { %v399_v62 = vpop.permute.xlu0 %398 }
 0x113   :  { %v575_v15 = vmul.f32 %v543_v9, %v543_v9  ;;  %v547_v16 = vadd.f32 %v399_v62, %v251_v29 }
 0x114   :  { %v384_v1 = vpop.permute.xlu1 %383 }
 0x115   :  { %v544_v2 = vadd.f32 %v384_v1, %v242_v24  ;;  %642 = vperm.xlu1 %1021, %v573_v63   ;;  %v579_v21 = vmul.f32 %v547_v16, %v547_v16 }
 0x116   :  { %v373_v4 = vpop.permute.xlu0 %372 }
 0x117   :  { %v576_v6 = vmul.f32 %v544_v2, %v544_v2  ;;  %v542_v7 = vadd.f32 %v373_v4, %v236_v27 }
 0x118   :  { %v388_v8 = vpop.permute.xlu1 %387 }
 0x119   :  { %v574_v11 = vmul.f32 %v542_v7, %v542_v7  ;;  %v545_v12 = vadd.f32 %v388_v8, %v245_v26  ;;  %651 = vperm.xlu0 %1020, %v576_v6  }
 0x11a   :  { %v407_v13 = vpop.permute.xlu0 %406 }
 0x11b   :  { %v577_v10 = vmul.f32 %v545_v12, %v545_v12  ;;  %645 = vperm.xlu1 %1021, %v574_v11   ;;  %v549_v22 = vadd.f32 %v407_v13, %v257_v31 }
 0x11c   :  { %v403_v14 = vpop.permute.xlu1 %402 }
 0x11d   :  { %v548_v17 = vadd.f32 %v403_v14, %v254_v28  ;;  %654 = vperm.xlu0 %1020, %v577_v10   ;;  %v581_v26 = vmul.f32 %v549_v22, %v549_v22 }
 0x11e   :  { %v422_v18 = vpop.permute.xlu0 %421 }
 0x11f   :  { %v580_v19 = vmul.f32 %v548_v17, %v548_v17  ;;  %648 = vperm.xlu1 %1021, %v575_v15   ;;  %v552_v27 = vadd.f32 %v422_v18, %v1244_v33 }
 0x120   :  { %v392_v20 = vpop.permute.xlu1 %391 }
 0x121   :  { %v546_v5 = vadd.f32 %v392_v20, %v248_v30  ;;  %663 = vperm.xlu0 %1020, %v580_v19   ;;  %v584_v55 = vmul.f32 %v552_v27, %v552_v27 }
 0x122   :  { %v426_v23 = vpop.permute.xlu0 %425 }
 0x123   :  { %v578_v24 = vmul.f32 %v546_v5, %v546_v5  ;;  %660 = vperm.xlu1 %1021, %v579_v21   ;;  %v553_v56 = vadd.f32 %v426_v23, %v1248_v35 }
 0x124   :  { %v418_v25 = vpop.permute.xlu1 %417 }
 0x125   :  { %v551_v53 = vadd.f32 %v418_v25, %v1242_v32  ;;  %657 = vperm.xlu0 %1020, %v578_v24   ;;  %v585_v59 = vmul.f32 %v553_v56, %v553_v56 }
 0x126   :  { %v441_v28 = vpop.permute.xlu0 %440 }
 0x127   :  { %v583_v29 = vmul.f32 %v551_v53, %v551_v53  ;;  %666 = vperm.xlu1 %1021, %v581_v26   ;;  %v556_v33 = vadd.f32 %v441_v28, %v1252_v37 }
 0x128   :  { %v411_v54 = vpop.permute.xlu1 %410 }
 0x129   :  { %v550_v30 = vadd.f32 %v411_v54, %v1246_v34  ;;  %672 = vperm.xlu0 %1020, %v583_v29   ;;  %v588_v63 = vmul.f32 %v556_v33, %v556_v33 }
 0x12a   :  { %v445_v31 = vpop.permute.xlu0 %444 }
 0x12b   :  { %v582_v57 = vmul.f32 %v550_v30, %v550_v30  ;;  %675 = vperm.xlu1 %1021, %v584_v55   ;;  %v557_v35 = vadd.f32 %v445_v31, %v1256_v39 }
 0x12c   :  { %v437_v58 = vpop.permute.xlu1 %436 }
 0x12d   :  { %v555_v32 = vadd.f32 %v437_v58, %v1250_v36  ;;  %669 = vperm.xlu0 %1020, %v582_v57   ;;  %v589_v6 = vmul.f32 %v557_v35, %v557_v35 }
 0x12e   :  { %v460_v60 = vpop.permute.xlu0 %459 }
 0x12f   :  { %v587_v61 = vmul.f32 %v555_v32, %v555_v32  ;;  %678 = vperm.xlu1 %1021, %v585_v59   ;;  %v560_v37 = vadd.f32 %v460_v60, %v1260_v41 }
 0x130   :  { %v430_v62 = vpop.permute.xlu1 %429 }
 0x131   :  { %v554_v34 = vadd.f32 %v430_v62, %v1254_v38  ;;  %684 = vperm.xlu0 %1020, %v587_v61   ;;  %v592_v11 = vmul.f32 %v560_v37, %v560_v37 }
 0x132   :  { %v464_v1 = vpop.permute.xlu0 %463 }
 0x133   :  { %v586_v2 = vmul.f32 %v554_v34, %v554_v34  ;;  %687 = vperm.xlu1 %1021, %v588_v63   ;;  %v561_v39 = vadd.f32 %v464_v1, %v1264_v43  ;;  %v732_v63 = vand.u32 127, %v107_v0 }
 0x134   :  { %v456_v4 = vpop.permute.xlu1 %455 }
 0x135   :  { %v559_v36 = vadd.f32 %v456_v4, %v1258_v40  ;;  %681 = vperm.xlu0 %1020, %v586_v2   ;;  %v593_v14 = vmul.f32 %v561_v39, %v561_v39  ;;  %v737_v1 = vadd.s32 4294967288, %v732_v63  ;;  %v744_v2 = vadd.s32 4294967280, %v732_v63 }
 0x136   :  { %v479_v7 = vpop.permute.xlu0 %478  ;;  %v751_v37 = vadd.s32 4294967272, %v732_v63 }
 0x137   :  { %v591_v8 = vmul.f32 %v559_v36, %v559_v36  ;;  %690 = vperm.xlu1 %1021, %v589_v6   ;;  %v564_v41 = vadd.f32 %v479_v7, %v1268_v45  ;;  %v1323_v6 = vsub.s32 %v732_v63, %v1180_v3  ;;  %v1328_v7 = vsub.s32 %v737_v1, %v1180_v3 }
 0x138   :  { %v449_v9 = vpop.permute.xlu1 %448  ;;  %v1332_v0 = vsub.s32 %v744_v2, %v1180_v3  ;;  %v1338_v39 = vsub.s32 %v751_v37, %v1180_v3 }
 0x139   :  { %v558_v38 = vadd.f32 %v449_v9, %v1262_v42  ;;  %696 = vperm.xlu0 %1020, %v591_v8   ;;  %v596_v18 = vmul.f32 %v564_v41, %v564_v41 }
 0x13a   :  { %v483_v12 = vpop.permute.xlu0 %482 }
 0x13b   :  { %v590_v13 = vmul.f32 %v558_v38, %v558_v38  ;;  %699 = vperm.xlu1 %1021, %v592_v11   ;;  %v565_v43 = vadd.f32 %v483_v12, %v1272_v47 }
 0x13c   :  { %v475_v10 = vpop.permute.xlu1 %474 }
 0x13d   :  { %v563_v40 = vadd.f32 %v475_v10, %v1266_v44  ;;  %693 = vperm.xlu0 %1020, %v590_v13   ;;  %v597_v21 = vmul.f32 %v565_v43, %v565_v43 }
 0x13e   :  { %v498_v16 = vpop.permute.xlu0 %497 }
 0x13f   :  { %v595_v15 = vmul.f32 %v563_v40, %v563_v40  ;;  %702 = vperm.xlu1 %1021, %v593_v14   ;;  %v568_v22 = vadd.f32 %v498_v16, %v1276_v49  ;;  %v1138_v49 = vmov 0.0  }
 0x140   :  { %v468_v17 = vpop.permute.xlu1 %467  ;;  %1003 = vmatprep.subr.mxu0 %v1138_v49  ;;  %1005 = vmatprep.mubr.msk.f32.mxu0 %vm1139_vm1, %v1138_v49 }
 0x141   :  { %v562_v42 = vadd.f32 %v468_v17, %v1270_v46  ;;  %708 = vperm.xlu0 %1020, %v595_v15   ;;  %v600_v24 = vmul.f32 %v568_v22, %v568_v22 }
 0x142   :  { %v502_v44 = vpop.permute.xlu0 %501 }
 0x143   :  { %v594_v19 = vmul.f32 %v562_v42, %v562_v42  ;;  %711 = vperm.xlu1 %1021, %v596_v18   ;;  %v569_v25 = vadd.f32 %v502_v44, %v1280_v51 }
 0x144   :  { %v494_v20 = vpop.permute.xlu1 %493 }
 0x145   :  { %v567_v45 = vadd.f32 %v494_v20, %v1274_v48  ;;  %705 = vperm.xlu0 %1020, %v594_v19   ;;  %v601_v27 = vmul.f32 %v569_v25, %v569_v25 }
 0x147   :  { %v599_v5 = vmul.f32 %v567_v45, %v567_v45  ;;  %714 = vperm.xlu1 %1021, %v597_v21  }
 0x148   :  { %v487_v23 = vpop.permute.xlu1 %486 }
 0x149   :  { %v566_v47 = vadd.f32 %v487_v23, %v1278_v50  ;;  %720 = vperm.xlu0 %1020, %v599_v5  }
 0x14b   :  { %v598_v46 = vmul.f32 %v566_v47, %v566_v47  ;;  %723 = vperm.xlu1 %1021, %v600_v24  }
 0x14c   :  { %v506_v26 = vpop.permute.xlu1 %505 }
 0x14d   :  { %v570_v53 = vadd.f32 %v506_v26, %v1282_v52  ;;  %717 = vperm.xlu0 %1020, %v598_v46  }
 0x14f   :  { %v602_v48 = vmul.f32 %v570_v53, %v570_v53  ;;  %726 = vperm.xlu1 %1021, %v601_v27  }
 0x151   :  { %729 = vperm.xlu0 %1020, %v602_v48  }
 0x18a   :  { %v637_v29 = vpop.permute.xlu0 %636 }
 0x18b   :  { %v736_v15 = vrot.slane %v637_v29, %v1323_v6 }
 0x18c   :  { %v640_v28 = vpop.permute.xlu1 %639 }
 0x18d   :  { %v741_v12 = vrot.slane %v640_v28, %v1328_v7 }
 0x18f   :  { %v743_v42 = vsel %vm742_vm2, %v741_v12, %v736_v15  ;;  %v1140_v15 = vmov 1.0  }
 0x190   :  { %v643_v51 = vpop.permute.xlu1 %642 }
 0x191   :  { %v748_v14 = vrot.slane %v643_v51, %v1332_v0 }
 0x193   :  { %v750_v22 = vsel %vm749_vm3, %v748_v14, %v743_v42 }
 0x194   :  { %v652_v54 = vpop.permute.xlu0 %651 }
 0x195   :  { %v765_v11 = vrot.slane %v652_v54, %v1328_v7 }
 0x196   :  { %v646_v50 = vpop.permute.xlu1 %645 }
 0x197   :  { %v755_v16 = vrot.slane %v646_v50, %v1338_v39 }
 0x198   :  { %v655_v55 = vpop.permute.xlu0 %654 }
 0x199   :  { %v770_v41 = vrot.slane %v655_v55, %v1332_v0  ;;  %v757_v44 = vsel %vm756_vm4, %v755_v16, %v750_v22 }
 0x19a   :  { %v649_v56 = vpop.permute.xlu1 %648 }
 0x19b   :  { %v761_v8 = vrot.slane %v649_v56, %v1323_v6 }
 0x19c   :  { %v664_v30 = vpop.permute.xlu0 %663 }
 0x19d   :  { %v766_v13 = vsel %vm742_vm2, %v765_v11, %v761_v8  ;;  %v784_v19 = vrot.slane %v664_v30, %v1328_v7 }
 0x19e   :  { %v661_v31 = vpop.permute.xlu1 %660  ;;  %v771_v17 = vsel %vm749_vm3, %v770_v41, %v766_v13 }
 0x19f   :  { %v780_v3 = vrot.slane %v661_v31, %v1323_v6 }
 0x1a0   :  { %v658_v57 = vpop.permute.xlu0 %657 }
 0x1a1   :  { %v775_v10 = vrot.slane %v658_v57, %v1338_v39  ;;  %v785_v5 = vsel %vm742_vm2, %v784_v19, %v780_v3 }
 0x1a2   :  { %v667_v58 = vpop.permute.xlu1 %666 }
 0x1a3   :  { %v789_v18 = vrot.slane %v667_v58, %v1332_v0  ;;  %v776_v20 = vsel %vm756_vm4, %v775_v10, %v771_v17 }
 0x1a4   :  { %v673_v52 = vpop.permute.xlu0 %672  ;;  %v892_v25 = vsel %vm891_vm5, %v776_v20, %v757_v44 }
 0x1a5   :  { %v799_v23 = vrot.slane %v673_v52, %v1323_v6  ;;  %v790_v47 = vsel %vm749_vm3, %v789_v18, %v785_v5 }
 0x1a6   :  { %v676_v59 = vpop.permute.xlu1 %675 }
 0x1a7   :  { %v803_v21 = vrot.slane %v676_v59, %v1328_v7 }
 0x1a8   :  { %v1305_v33 = vpop.permute.xlu0 %669 }
 0x1a9   :  { %v794_v24 = vrot.slane %v1305_v33, %v1338_v39  ;;  %v804_v53 = vsel %vm742_vm2, %v803_v21, %v799_v23 }
 0x1aa   :  { %v1307_v32 = vpop.permute.xlu1 %678 }
 0x1ab   :  { %v808_v46 = vrot.slane %v1307_v32, %v1332_v0  ;;  %v795_v56 = vsel %vm756_vm4, %v794_v24, %v790_v47 }
 0x1ac   :  { %v1309_v60 = vpop.permute.xlu0 %684  ;;  %v894_v37 = vsel %vm893_vm6, %v795_v56, %v892_v25 }
 0x1ad   :  { %v818_v29 = vrot.slane %v1309_v60, %v1323_v6  ;;  %v809_v58 = vsel %vm749_vm3, %v808_v46, %v804_v53 }
 0x1ae   :  { %v1311_v61 = vpop.permute.xlu1 %687 }
 0x1af   :  { %v822_v26 = vrot.slane %v1311_v61, %v1328_v7 }
 0x1b0   :  { %v1313_v62 = vpop.permute.xlu0 %681 }
 0x1b1   :  { %v813_v49 = vrot.slane %v1313_v62, %v1338_v39  ;;  %v823_v52 = vsel %vm742_vm2, %v822_v26, %v818_v29 }
 0x1b2   :  { %v1316_v35 = vpop.permute.xlu1 %690 }
 0x1b3   :  { %v827_v48 = vrot.slane %v1316_v35, %v1332_v0  ;;  %v814_v60 = vsel %vm756_vm4, %v813_v49, %v809_v58 }
 0x1b4   :  { %v1318_v34 = vpop.permute.xlu0 %696 }
 0x1b5   :  { %v837_v30 = vrot.slane %v1318_v34, %v1323_v6  ;;  %v828_v61 = vsel %vm749_vm3, %v827_v48, %v823_v52 }
 0x1b6   :  { %v1320_v4 = vpop.permute.xlu1 %699 }
 0x1b7   :  { %v841_v28 = vrot.slane %v1320_v4, %v1328_v7 }
 0x1b8   :  { %v1325_v36 = vpop.permute.xlu0 %693 }
 0x1b9   :  { %v832_v51 = vrot.slane %v1325_v36, %v1338_v39  ;;  %v842_v62 = vsel %vm742_vm2, %v841_v28, %v837_v30 }
 0x1ba   :  { %v1334_v9 = vpop.permute.xlu1 %702 }
 0x1bb   :  { %v846_v54 = vrot.slane %v1334_v9, %v1332_v0  ;;  %v833_v35 = vsel %vm756_vm4, %v832_v51, %v828_v61  ;;  %v896_v9 = vsel %vm895_vm7, %v814_v60, %v894_v37 }
 0x1bc   :  { %v709_v38 = vpop.permute.xlu0 %708  ;;  %v898_v13 = vsel %vm897_vm8, %v833_v35, %v896_v9 }
 0x1bd   :  { %v856_v59 = vrot.slane %v709_v38, %v1323_v6  ;;  %v847_v34 = vsel %vm749_vm3, %v846_v54, %v842_v62 }
 0x1be   :  { %v712_v40 = vpop.permute.xlu1 %711 }
 0x1bf   :  { %v860_v50 = vrot.slane %v712_v40, %v1328_v7 }
 0x1c0   :  { %v706_v43 = vpop.permute.xlu0 %705 }
 0x1c1   :  { %v851_v31 = vrot.slane %v706_v43, %v1338_v39  ;;  %v861_v1 = vsel %vm742_vm2, %v860_v50, %v856_v59 }
 0x1c2   :  { %v715_v45 = vpop.permute.xlu1 %714 }
 0x1c3   :  { %v865_v57 = vrot.slane %v715_v45, %v1332_v0  ;;  %v852_v36 = vsel %vm756_vm4, %v851_v31, %v847_v34 }
 0x1c4   :  { %v721_v27 = vpop.permute.xlu0 %720  ;;  %v900_v14 = vsel %vm899_vm9, %v852_v36, %v898_v13 }
 0x1c5   :  { %v875_v2 = vrot.slane %v721_v27, %v1323_v6 }
 0x1c6   :  { %v724_v55 = vpop.permute.xlu1 %723 }
 0x1c7   :  { %v879_v33 = vrot.slane %v724_v55, %v1328_v7  ;;  %v866_v7 = vsel %vm749_vm3, %v865_v57, %v861_v1 }
 0x1c8   :  { %v718_v32 = vpop.permute.xlu0 %717 }
 0x1c9   :  { %v870_v63 = vrot.slane %v718_v32, %v1338_v39  ;;  %v880_v11 = vsel %vm742_vm2, %v879_v33, %v875_v2 }
 0x1ca   :  { %v727_v4 = vpop.permute.xlu1 %726 }
 0x1cb   :  { %v884_v8 = vrot.slane %v727_v4, %v1332_v0  ;;  %v871_v38 = vsel %vm756_vm4, %v870_v63, %v866_v7 }
 0x1cc   :  { %v730_v12 = vpop.permute.xlu0 %729  ;;  %v902_v0 = vsel %vm901_vm10, %v871_v38, %v900_v14 }
 0x1cd   :  { %v885_v6 = vsel %vm749_vm3, %v884_v8, %v880_v11  ;;  %v889_v10 = vrot.slane %v730_v12, %v1338_v39 }
 0x1cf   :  { %v890_v41 = vsel %vm756_vm4, %v889_v10, %v885_v6 }
 0x1d0   :  { %v904_v40 = vsel %vm903_vm11, %v890_v41, %v902_v0 }
 0x1d1   :  { %1004 = vmatpush3.xpose.msk.msra.mxu0 %vm224_vm0, %v904_v40 }
 0x1d4   :  { %1006 = vmatmul.mubr.msk.f32.vlgmr.msra.gmra.mxu0 %vm224_vm0, %v1140_v15 }
 0x294   :  { %v976_v16 = vpop.f32.mrf.mxu0 }
 0x295   :  { %981 = vst.msk [vmem:[#allocation10] sm:$0x1] %vm980_vm12, %v976_v16 }
 0x296   :  { %v1007_v3 = vpop.f32.mrf.mxu0 }
 0x297   :  { %1113 = shalt.err (!%p1110_p10)
}
 0x298   :  { %991 = dma.vmem_to_hbm [thread:$0]  %s989_s3, 16, %s1418_s4, [#allocation4]  }
 0x299   :  { %1128 = dma.done.wait [#allocation4], 16  }
 0x29a   :  { %1129 = vsyncadd [#allocation4], 4294967280 }
 0x29b   :  { %995 = vsyncpa [#allocation3], 1 }
 0x29c   :  { %996 = vsyncpa [#allocation6], 1 }
 0x29d   :  { %997 = vsyncpa [#allocation9], 1 }
 0x29e   :  { %998 = vsyncpa [#allocation4], 1 }

</bundles_post_ra>
